<compile_context>
chip_gen: v6e
topology: v6e:2x2x1
jax: 0.10.0
libtpu: 0.0.40
codegen_flags: <defaults>
</compile_context>

<pallas_src>
import functools

import jax
import jax.numpy as jnp
from jax.experimental import pallas as pl
from jax.experimental.pallas import tpu as pltpu


def _pick_lane_tile(L, target=2048):
    """Largest multiple-of-128 divisor of L that is <= target; else full L."""
    best = None
    t = 128
    while t <= min(target, L):
        if L % t == 0:
            best = t
        t += 128
    return best if best is not None else L


# --------------------------------------------------------------------------
# Fused single-pass kernel (whole tensor resident in VMEM).
# --------------------------------------------------------------------------
def actnorm_fused_kernel(x_ref, y_ref, logdet_ref, *, n_elems, hw):
    """x_ref: (N, C, L). y_ref: (N, C, L). logdet_ref: (1, 1)."""
    x = x_ref[...].astype(jnp.float32)                    # (N, C, L)
    # Reduce the leading (batch) axis with cheap elementwise adds first,
    # then a single lane (XLU) reduction per channel.
    xs = jnp.sum(x, axis=0)                               # (C, L)
    xss = jnp.sum(x * x, axis=0)                          # (C, L)
    s = jnp.sum(xs, axis=1, keepdims=True)                # (C, 1)
    ss = jnp.sum(xss, axis=1, keepdims=True)              # (C, 1)

    mean = s / n_elems
    # unbiased variance (ddof=1), like torch.std; f32 accumulation above.
    var = (ss - s * mean) / (n_elems - 1.0)
    std = jnp.sqrt(jnp.maximum(var, 0.0))
    scale = 1.0 / (std + 1e-6)                            # (C, 1)
    loc = -mean                                           # (C, 1)

    y_ref[...] = (scale[None] * (x + loc[None])).astype(y_ref.dtype)
    logdet_ref[...] = hw * jnp.sum(jnp.log(jnp.abs(scale)), keepdims=True)


# --------------------------------------------------------------------------
# Streaming two-pass kernels (general / large-tensor path).
# --------------------------------------------------------------------------
def actnorm_stats_kernel(x_ref, loc_ref, scale_ref, logdet_ref,
                         sum_ref, sumsq_ref, *, n_elems, hw):
    """Pass 1: accumulate per-channel sum / sumsq over (N, L) tiles.

    x_ref: (1, C, Lt).  Outputs: loc (C, 1), scale (C, 1), logdet (1, 1).
    sum_ref / sumsq_ref: persistent (C, 1) f32 VMEM accumulators.
    """
    n = pl.program_id(0)
    l = pl.program_id(1)

    @pl.when((n == 0) & (l == 0))
    def _init():
        sum_ref[...] = jnp.zeros_like(sum_ref)
        sumsq_ref[...] = jnp.zeros_like(sumsq_ref)

    x = x_ref[0].astype(jnp.float32)                         # (C, Lt)
    sum_ref[...] += jnp.sum(x, axis=1, keepdims=True)        # (C, 1)
    sumsq_ref[...] += jnp.sum(x * x, axis=1, keepdims=True)  # (C, 1)

    @pl.when((n == pl.num_programs(0) - 1) & (l == pl.num_programs(1) - 1))
    def _finalize():
        s = sum_ref[...]
        mean = s / n_elems
        var = (sumsq_ref[...] - s * mean) / (n_elems - 1.0)
        std = jnp.sqrt(jnp.maximum(var, 0.0))
        scale = 1.0 / (std + 1e-6)
        loc_ref[...] = -mean
        scale_ref[...] = scale
        logdet_ref[...] = hw * jnp.sum(jnp.log(jnp.abs(scale)), keepdims=True)


def actnorm_apply_kernel(x_ref, loc_ref, scale_ref, y_ref):
    """Pass 2: y = scale * (x + loc), per-channel broadcast over the lane axis."""
    x = x_ref[...].astype(jnp.float32)        # (1, C, Lt)
    loc = loc_ref[...][None]                  # (1, C, 1)
    scale = scale_ref[...][None]              # (1, C, 1)
    y_ref[...] = (scale * (x + loc)).astype(y_ref.dtype)


# --------------------------------------------------------------------------
# Wrapper.
# --------------------------------------------------------------------------
def actnorm_forward(x, logdet=True, lane_tile_target=2048,
                    fused_f32_bytes_limit=4 << 20):
    """ActNorm forward (first-call / data-dependent-init path), NCHW input."""
    N, C, H, W = x.shape
    L = H * W
    n_elems = float(N * L)
    hw = float(H * W)

    # Zero-copy view: channels on sublanes, flattened H*W on lanes.
    x3 = x.reshape(N, C, L)

    # ---- Fast path: whole tensor fits in VMEM -> single fused kernel. ----
    if N * C * L * 4 <= fused_f32_bytes_limit:
        y3, ld = pl.pallas_call(
            functools.partial(actnorm_fused_kernel, n_elems=n_elems, hw=hw),
            out_shape=(
                jax.ShapeDtypeStruct((N, C, L), x.dtype),
                jax.ShapeDtypeStruct((1, 1), jnp.float32),
            ),
            compiler_params=pltpu.CompilerParams(vmem_limit_bytes=32 << 20),
        )(x3)
        y = y3.reshape(N, C, H, W)
        return (y, ld[0, 0]) if logdet else y

    # ---- General path: two streaming passes. ----
    Lt = _pick_lane_tile(L, lane_tile_target)
    num_lt = L // Lt

    # Pass 1: per-channel statistics (reduction over N and L tiles).
    loc, scale, ld = pl.pallas_call(
        functools.partial(actnorm_stats_kernel, n_elems=n_elems, hw=hw),
        grid_spec=pltpu.PrefetchScalarGridSpec(
            num_scalar_prefetch=0,
            grid=(N, num_lt),
            in_specs=[pl.BlockSpec((1, C, Lt), lambda n, l: (n, 0, l))],
            out_specs=(
                pl.BlockSpec((C, 1), lambda n, l: (0, 0)),
                pl.BlockSpec((C, 1), lambda n, l: (0, 0)),
                pl.BlockSpec((1, 1), lambda n, l: (0, 0)),
            ),
            scratch_shapes=[pltpu.VMEM((C, 1), jnp.float32),
                            pltpu.VMEM((C, 1), jnp.float32)],
        ),
        out_shape=(
            jax.ShapeDtypeStruct((C, 1), jnp.float32),
            jax.ShapeDtypeStruct((C, 1), jnp.float32),
            jax.ShapeDtypeStruct((1, 1), jnp.float32),
        ),
        compiler_params=pltpu.CompilerParams(
            dimension_semantics=("arbitrary", "arbitrary")),
    )(x3)

    # Pass 2: streaming affine transform (fully parallel grid).
    y3 = pl.pallas_call(
        actnorm_apply_kernel,
        grid_spec=pltpu.PrefetchScalarGridSpec(
            num_scalar_prefetch=0,
            grid=(N, num_lt),
            in_specs=[
                pl.BlockSpec((1, C, Lt), lambda n, l: (n, 0, l)),
                pl.BlockSpec((C, 1), lambda n, l: (0, 0)),
                pl.BlockSpec((C, 1), lambda n, l: (0, 0)),
            ],
            out_specs=pl.BlockSpec((1, C, Lt), lambda n, l: (n, 0, l)),
        ),
        out_shape=jax.ShapeDtypeStruct((N, C, L), x.dtype),
        compiler_params=pltpu.CompilerParams(
            dimension_semantics=("parallel", "parallel")),
    )(x3, loc, scale)

    y = y3.reshape(N, C, H, W)
    return (y, ld[0, 0]) if logdet else y


def actnorm_ref(x):
    """Pure-JAX reference mirroring the PyTorch module's first forward call."""
    flat = jnp.transpose(x, (1, 0, 2, 3)).reshape(x.shape[1], -1)
    mean = flat.mean(axis=1).reshape(1, -1, 1, 1)
    std = flat.std(axis=1, ddof=1).reshape(1, -1, 1, 1)
    loc = -mean
    scale = 1.0 / (std + 1e-6)
    y = scale * (x + loc)
    ld = x.shape[2] * x.shape[3] * jnp.sum(jnp.log(jnp.abs(scale)))
    return y, ld


if __name__ == "__main__":
    key = jax.random.PRNGKey(0)
    x = jax.random.normal(key, (2, 4, 16, 16), dtype=jnp.float32) * 1.7 + 0.3

    # Fused (small-tensor) path.
    y, logdet_val = actnorm_forward(x, logdet=True)
    jax.block_until_ready((y, logdet_val))

    # Streaming (two-pass) path, forced by a tiny fused-path threshold.
    y2, logdet_val2 = actnorm_forward(x, logdet=True, fused_f32_bytes_limit=0)
    jax.block_until_ready((y2, logdet_val2))

    y_ref, logdet_ref_val = actnorm_ref(x)
    assert jnp.allclose(y, y_ref, atol=1e-4, rtol=1e-4)
    assert jnp.allclose(logdet_val, logdet_ref_val, atol=1e-3, rtol=1e-4)
    assert jnp.allclose(y2, y_ref, atol=1e-4, rtol=1e-4)
    assert jnp.allclose(logdet_val2, logdet_ref_val, atol=1e-3, rtol=1e-4)

    print("KERNEL_OK")
</pallas_src>

<mosaic_0001>
module attributes {stable_mosaic.version = 11 : i64} {
  func.func @actnorm_fused_kernel(%arg0: memref<2x4x256xf32, #tpu.memory_space<vmem>>, %arg1: memref<2x4x256xf32, #tpu.memory_space<vmem>>, %arg2: memref<1x1xf32, #tpu.memory_space<vmem>>) attributes {dimension_semantics = [], scalar_prefetch = 0 : i64, scratch_operands = 0 : i64, tpu.core_type = #tpu.core_type<tc>} {
    %c0 = arith.constant 0 : index
    %c0_0 = arith.constant 0 : index
    %c0_1 = arith.constant 0 : index
    %0 = vector.load %arg0[%c0, %c0_0, %c0_1] : memref<2x4x256xf32, #tpu.memory_space<vmem>>, vector<2x4x256xf32>
    %cst = arith.constant dense<0.000000e+00> : vector<4x256xf32>
    %1 = vector.multi_reduction <add>, %0, %cst [0] : vector<2x4x256xf32> to vector<4x256xf32>
    %2 = arith.mulf %0, %0 : vector<2x4x256xf32>
    %cst_2 = arith.constant dense<0.000000e+00> : vector<4x256xf32>
    %3 = vector.multi_reduction <add>, %2, %cst_2 [0] : vector<2x4x256xf32> to vector<4x256xf32>
    %cst_3 = arith.constant dense<0.000000e+00> : vector<4xf32>
    %4 = vector.multi_reduction <add>, %1, %cst_3 [1] : vector<4x256xf32> to vector<4xf32>
    %5 = vector.shape_cast %4 : vector<4xf32> to vector<4x1xf32>
    %cst_4 = arith.constant dense<0.000000e+00> : vector<4xf32>
    %6 = vector.multi_reduction <add>, %3, %cst_4 [1] : vector<4x256xf32> to vector<4xf32>
    %7 = vector.shape_cast %6 : vector<4xf32> to vector<4x1xf32>
    %cst_5 = arith.constant 5.120000e+02 : f32
    %8 = vector.broadcast %cst_5 : f32 to vector<4x1xf32>
    %9 = arith.divf %5, %8 : vector<4x1xf32>
    %10 = arith.mulf %5, %9 : vector<4x1xf32>
    %11 = arith.subf %7, %10 : vector<4x1xf32>
    %cst_6 = arith.constant 5.110000e+02 : f32
    %12 = vector.broadcast %cst_6 : f32 to vector<4x1xf32>
    %13 = arith.divf %11, %12 : vector<4x1xf32>
    %cst_7 = arith.constant 0.000000e+00 : f32
    %14 = vector.broadcast %cst_7 : f32 to vector<4x1xf32>
    %15 = arith.maximumf %13, %14 : vector<4x1xf32>
    %16 = math.sqrt %15 : vector<4x1xf32>
    %cst_8 = arith.constant 9.99999997E-7 : f32
    %17 = vector.broadcast %cst_8 : f32 to vector<4x1xf32>
    %18 = arith.addf %16, %17 : vector<4x1xf32>
    %cst_9 = arith.constant 1.000000e+00 : f32
    %19 = vector.broadcast %cst_9 : f32 to vector<4x1xf32>
    %20 = arith.divf %19, %18 : vector<4x1xf32>
    %cst_10 = arith.constant 0.000000e+00 : f32
    %21 = vector.broadcast %cst_10 : f32 to vector<4x1xf32>
    %22 = arith.subf %21, %9 : vector<4x1xf32>
    %23 = vector.shape_cast %20 : vector<4x1xf32> to vector<1x4x1xf32>
    %24 = vector.shape_cast %22 : vector<4x1xf32> to vector<1x4x1xf32>
    %25 = vector.broadcast %24 : vector<1x4x1xf32> to vector<2x4x256xf32>
    %26 = arith.addf %0, %25 : vector<2x4x256xf32>
    %27 = vector.broadcast %23 : vector<1x4x1xf32> to vector<2x4x256xf32>
    %28 = arith.mulf %27, %26 : vector<2x4x256xf32>
    %c0_11 = arith.constant 0 : index
    %c0_12 = arith.constant 0 : index
    %c0_13 = arith.constant 0 : index
    %29 = vector.load %arg1[%c0_11, %c0_12, %c0_13] : memref<2x4x256xf32, #tpu.memory_space<vmem>>, vector<2x4x256xf32>
    tpu.vector_store %arg1[%c0_11, %c0_12, %c0_13], %28 {strides = array<i32>} : memref<2x4x256xf32, #tpu.memory_space<vmem>>, vector<2x4x256xf32>,
    %30 = math.absf %20 : vector<4x1xf32>
    %31 = math.log %30 : vector<4x1xf32>
    %32 = vector.shape_cast %31 : vector<4x1xf32> to vector<1x4x1xf32>
    %cst_14 = arith.constant dense<0.000000e+00> : vector<1xf32>
    %33 = vector.multi_reduction <add>, %32, %cst_14 [1, 2] : vector<1x4x1xf32> to vector<1xf32>
    %34 = vector.shape_cast %33 : vector<1xf32> to vector<1x1x1xf32>
    %35 = vector.extract %34[0, 0, 0] : f32 from vector<1x1x1xf32>
    %36 = vector.broadcast %35 : f32 to vector<1x1xf32>
    %cst_15 = arith.constant 2.560000e+02 : f32
    %37 = vector.broadcast %cst_15 : f32 to vector<1x1xf32>
    %38 = arith.mulf %37, %36 : vector<1x1xf32>
    %c0_16 = arith.constant 0 : index
    %c0_17 = arith.constant 0 : index
    %39 = vector.load %arg2[%c0_16, %c0_17] : memref<1x1xf32, #tpu.memory_space<vmem>>, vector<1x1xf32>
    tpu.vector_store %arg2[%c0_16, %c0_17], %38 {strides = array<i32>} : memref<1x1xf32, #tpu.memory_space<vmem>>, vector<1x1xf32>,
    return
  }
}

</mosaic_0001>

<bundles_post_ra>
// kernel: tpu_custom_call.1
= control target key start
LH: loop header
LB: loop body
LE: loop exit
PB: predicated region body
PF: predicated region fallthrough
CT: control target
= control target key end

     0   :  { %8 = vsyncpa [#allocation3], 0  ;;  %s293_s0 = inlined_call_operand.hbm [shape: f32[2,4,256], index: 0, kind: input, shape index: {}]   ;;  %s294_s1 = inlined_call_operand.hbm [shape: f32[2,4,256], index: 1, kind: output, shape index: {0}]   ;;  %s295_s2 = inlined_call_operand.hbm [shape: f32[1,1], index: 2, kind: output, shape index: {1}]  }
   0x1   :  { %9 = vsyncpa [#allocation4], 0 }
   0x2   :  { %10 = vsyncpa [#allocation7], 0  ;;  %s245_s9 = smov [#allocation2]  }
   0x3   :  { %s16_s10 = sshll.u32 %s245_s9, 4  ;;  %s17_s10 = int_to_ptr.vmem [resolvable:$true] %s16_s10 }
   0x4   :  { %s187_s11 = scalar_lea.vmem %s17_s10, 256  ;;  %p192_p1 = scmp.lt.s32.totalorder %s17_s10, %s17_s10 }
   0x5   :  { %p188_p0 = scmp.ne.s32.totalorder %s17_s10, %s187_s11  ;;  %p193_p2 = scmp.lt.s32.totalorder %s187_s11, %s187_s11 }
   0x7   :  { %p194_p3 = por %p193_p2, %p192_p1 }
   0x9   :  { %p195_p4 = pnand %p194_p3, %p188_p0 }
   0xb   :  { %198 = shalt.err (!%p195_p4)
}
   0xc   :  { %s246_s12 = smov 128   ;;  %s247_s13 = smov 8  }
   0xd   :  { %22 = dma.hbm_to_vmem [thread:$0]  %s293_s0, 256, %s17_s10, [#allocation3], %s246_s12, %s246_s12, %s247_s13  }
   0xe   :  { %239 = dma.done.wait [#allocation3], 256  }
   0xf   :  { %240 = vsyncadd [#allocation3], 4294967040  ;;  %vm34_vm0 = vcmask 1043456   ;;  %v26_v0 = vld [vmem:[#allocation2] sm:$0xff]  ;;  %v27_v1 = vld [vmem:[#allocation2 + $0x8] sm:$0xff]  ;;  %v87_v35 = vlaneseq  ;;  %vm117_vm3 = vcmask 3072  }
  0x10   :  { %v30_v2 = vcombine.high %v26_v0, %v26_v0  ;;  %v31_v3 = vcombine.high %v27_v1, %v27_v1  ;;  %v35_v4 = vsel %vm34_vm0, %v26_v0, 0.0  ;;  %v36_v5 = vsel %vm34_vm0, %v27_v1, 0.0  ;;  %s249_s0 = smov [#allocation5]  }
  0x11   :  { %v37_v6 = vadd.f32 %v36_v5, %v35_v4  ;;  %v41_v7 = vmul.f32 %v26_v0, %v26_v0  ;;  %v42_v8 = vmul.f32 %v27_v1, %v27_v1  ;;  %v248_v33 = vmov 839922192   ;;  %s137_s16 = sshll.u32 %s249_s0, 4  ;;  %s138_s16 = int_to_ptr.vmem [resolvable:$true] %s137_s16 }
  0x12   :  { %v38_v9 = vsel %vm34_vm0, %v30_v2, 0.0  ;;  %v39_v10 = vsel %vm34_vm0, %v31_v3, 0.0  ;;  %v85_v34 = vunpack.c.l.s4 %v248_v33  ;;  %v88_v40 = vshrl.u32 %v87_v35, 7  ;;  %s199_s17 = scalar_lea.vmem %s138_s16, 256  ;;  %p204_p6 = scmp.lt.s32.totalorder %s138_s16, %s138_s16 }
  0x13   :  { %v40_v11 = vadd.f32 %v39_v10, %v38_v9  ;;  %v55_v12 = vsel %vm34_vm0, %v37_v6, 0.0  ;;  %v45_v13 = vcombine.high %v41_v7, %v41_v7  ;;  %v46_v14 = vcombine.high %v42_v8, %v42_v8  ;;  %p200_p5 = scmp.ne.s32.totalorder %s138_s16, %s199_s17  ;;  %p205_p7 = scmp.lt.s32.totalorder %s199_s17, %s199_s17 }
  0x14   :  { %v49_v15 = vsel %vm34_vm0, %v41_v7, 0.0  ;;  %v50_v16 = vsel %vm34_vm0, %v42_v8, 0.0  ;;  %v86_v39 = vunpack.c.0.s8 %v85_v34 }
  0x15   :  { %v56_v17 = vsel %vm34_vm0, %v40_v11, 0.0  ;;  %v51_v18 = vadd.f32 %v50_v16, %v49_v15  ;;  %v52_v19 = vsel %vm34_vm0, %v45_v13, 0.0  ;;  %v53_v20 = vsel %vm34_vm0, %v46_v14, 0.0  ;;  %p206_p8 = por %p205_p7, %p204_p6 }
  0x16   :  { %v57_v21 = vadd.f32 %v56_v17, %v55_v12  ;;  %v54_v22 = vadd.f32 %v53_v20, %v52_v19  ;;  %v89_v44 = vsub.s32 %v86_v39, %v88_v40 }
  0x17   :  { %v60_v23 = vsel %vm34_vm0, %v51_v18, 0.0  ;;  %p207_p9 = pnand %p206_p8, %p200_p5 }
  0x18   :  { %58 = vadd.xlane.f32.xlu0 %v57_v21  ;;  %v61_v24 = vsel %vm34_vm0, %v54_v22, 0.0 }
  0x19   :  { %v62_v25 = vadd.f32 %v61_v24, %v60_v23 }
  0x1c   :  { %63 = vadd.xlane.f32.xlu0 %v62_v25 }
  0xa1   :  { %v59_v26 = vpop.xlane.xlu0 %58 }
  0xa2   :  { %v66_v27 = vmul.f32 0.001953125, %v59_v26 }
  0xa4   :  { %v67_v28 = vmul.f32 %v66_v27, %v59_v26  ;;  %v82_v45 = vsub.f32 0.0, %v66_v27 }
  0xa5   :  { %v64_v29 = vpop.xlane.xlu0 %63 }
  0xa6   :  { %v68_v30 = vsub.f32 %v64_v29, %v67_v28  ;;  %v90_v46 = vrot.slane %v82_v45, %v89_v44 }
  0xa8   :  { %v70_v31 = vmul.f32 0.0019569471, %v68_v30  ;;  %v92_v47 = vadd.f32 %v90_v46, %v26_v0  ;;  %v93_v48 = vadd.f32 %v90_v46, %v27_v1 }
  0xaa   :  { %v71_v32 = vmax.f32 %v70_v31, 0.0  ;;  %v96_v49 = vcombine.high %v92_v47, %v92_v47  ;;  %v97_v51 = vcombine.high %v93_v48, %v93_v48 }
  0xac   :  { %173 = vrsqrt.f32 %v71_v32  ;;  %vm74_vm1 = vcmp.eq.f32.partialorder %v71_v32, inf  ;;  %v77_v38 = vand.u32 2147483648, %v71_v32  ;;  %vm76_vm2 = vcmp.eq.f32.partialorder %v71_v32, 0.0 }
  0xb9   :  { %v174_v36 = vpop.eup %173 }
  0xba   :  { %v73_v37 = vmul.f32 %v174_v36, %v71_v32 }
  0xbc   :  { %v75_v41 = vsel %vm74_vm1, %v71_v32, %v73_v37 }
  0xbd   :  { %v78_v42 = vsel %vm76_vm2, %v77_v38, %v75_v41 }
  0xbe   :  { %v79_v43 = vadd.f32 1e-06, %v78_v42 }
  0xc0   :  { %175 = vrcp.f32 %v79_v43 }
  0xcd   :  { %v176_v50 = vpop.eup %175 }
  0xce   :  { %v114_v52 = vand.u32 2147483647, %v176_v50  ;;  %v100_v53 = vmul.f32 %v176_v50, %v92_v47  ;;  %v101_v54 = vmul.f32 %v176_v50, %v96_v49  ;;  %v102_v55 = vmul.f32 %v176_v50, %v93_v48 }
  0xcf   :  { %v103_v56 = vmul.f32 %v176_v50, %v97_v51 }
  0xd0   :  { %177 = vlog2.f32 %v114_v52  ;;  %v108_v57 = vcombine.low %v100_v53, %v101_v54 }
  0xd1   :  { %v109_v58 = vcombine.low %v102_v55, %v103_v56 }
  0xd2   :  { %112 = vst [vmem:[#allocation5] sm:$0xff] %v108_v57 }
  0xd3   :  { %113 = vst [vmem:[#allocation5 + $0x8] sm:$0xff] %v109_v58 }
  0xdd   :  { %v178_v59 = vpop.eup %177 }
  0xde   :  { %v116_v60 = vmul.f32 0.6931472, %v178_v59 }
  0xe0   :  { %v118_v61 = vsel %vm117_vm3, %v116_v60, 0.0 }
  0xe1   :  { %119 = vadd.xlane.f32.xlu1 %v118_v61 }
  0xe2   :  { %210 = shalt.err (!%p207_p9)
}
  0xe3   :  { %143 = dma.vmem_to_hbm [thread:$0]  %s138_s16, 256, %s294_s1, [#allocation4], %s246_s12, %s246_s12, %s247_s13   ;;  %vm130_vm4 = vcmask 0  }
  0xe4   :  { %s250_s20 = smov [#allocation6]  }
  0xe5   :  { %s150_s21 = sshll.u32 %s250_s20, 4  ;;  %s151_s21 = int_to_ptr.vmem [resolvable:$true] %s150_s21 }
  0xe6   :  { %s219_s23 = scalar_lea.vmem %s151_s21, 16  ;;  %s223_s24 = scalar_lea.vmem %s151_s21, 32 }
  0xe7   :  { %p220_p10 = scmp.ne.s32.totalorder %s151_s21, %s219_s23  ;;  %p224_p11 = scmp.lt.s32.totalorder %s151_s21, %s151_s21 }
  0xe8   :  { %p225_p12 = scmp.lt.s32.totalorder %s223_s24, %s219_s23 }
  0xea   :  { %p226_p13 = por %p225_p12, %p224_p11 }
  0xec   :  { %p227_p0 = pnand %p226_p13, %p220_p10 }
 0x16a   :  { %v120_v62 = vpop.xlane.xlu1 %119 }
 0x16b   :  { %v121_v63 = vrot.slane %v120_v62, 4 }
 0x16d   :  { %v122_v0 = vadd.f32 %v121_v63, %v120_v62 }
 0x16f   :  { %v123_v1 = vrot.slane %v122_v0, 2 }
 0x171   :  { %v124_v2 = vadd.f32 %v123_v1, %v122_v0 }
 0x173   :  { %v125_v3 = vrot.slane %v124_v2, 1 }
 0x175   :  { %v126_v4 = vadd.f32 %v125_v3, %v124_v2 }
 0x177   :  { %163 = vpush %v126_v4 }
 0x1a8   :  { %s164_s22 = spop %163 }
 0x1a9   :  { %v128_v5 = vstv %s164_s22 }
 0x1aa   :  { %v129_v6 = vmul.f32 256.0, %v128_v5 }
 0x1ac   :  { %131 = vst.msk [vmem:[#allocation6] sm:$0x1] %vm130_vm4, %v129_v6 }
 0x1ad   :  { %230 = shalt.err (!%p227_p0)
}
 0x1ae   :  { %153 = dma.vmem_to_hbm [thread:$0]  %s151_s21, 16, %s295_s2, [#allocation7]  }
 0x1af   :  { %241 = dma.done.wait [#allocation4], 256  }
 0x1b0   :  { %242 = vsyncadd [#allocation4], 4294967040 }
 0x1b1   :  { %243 = dma.done.wait [#allocation7], 16  }
 0x1b2   :  { %244 = vsyncadd [#allocation7], 4294967280 }
 0x1b3   :  { %160 = vsyncpa [#allocation3], 1 }
 0x1b4   :  { %161 = vsyncpa [#allocation4], 1 }
 0x1b5   :  { %162 = vsyncpa [#allocation7], 1 }

</bundles_post_ra>
